<compile_context>
chip_gen: v7x
topology: tpu7x:2x2x1
jax: 0.10.0
libtpu: 0.0.40
codegen_flags: <defaults>
</compile_context>

<pallas_src>
import jax
import jax.numpy as jnp
from jax.experimental import pallas as pl
from jax.experimental.pallas import tpu as pltpu

EPS = 1e-12
POWER_ITERATIONS = 1      # matches SpectralNorm(power_iterations=1)
LANE = 128                # TPU lane width
SUBLANE = 8               # TPU sublane width (f32)


# ----------------------------------------------------------------------------
# Kernel 1: power iteration -> inv_sigma, u, v   (the weight is NOT rescaled here;
# 1/sigma is fused into the conv epilogue instead).
#   w : (cout, K) = weight_bar.view(cout, -1)
#   u : (8, cout) — row 0 is the real u vector, rows 1..7 are zero padding so every
#       matvec presents a sublane-aligned (8, .) LHS to the MXU.
# ----------------------------------------------------------------------------
def _power_iter_kernel(w_ref, u_ref, inv_sigma_ref, u_out_ref, v_out_ref):
    w = w_ref[...].astype(jnp.float32)                  # (cout, K)
    u = u_ref[...].astype(jnp.float32)                  # (8, cout)
    v = jnp.zeros((u.shape[0], w.shape[1]), jnp.float32)
    wv = jnp.zeros_like(u)
    for _ in range(POWER_ITERATIONS):                   # static unroll
        # v = l2normalize(W^T u): row-vector matvec on the MXU (W never transposed).
        v = jnp.dot(u, w, preferred_element_type=jnp.float32)            # (8, K)
        v = v * jax.lax.rsqrt(jnp.sum(v * v) + EPS)                      # EUP rsqrt + VPU mul
        # W v (as rows): contract the K axes ("trans_b" form, like QK^T).
        wv = jax.lax.dot_general(v, w, (((1,), (1,)), ((), ())),
                                 preferred_element_type=jnp.float32)     # (8, cout)
        u = wv * jax.lax.rsqrt(jnp.sum(wv * wv) + EPS)
    # NOTE: the norms sum all 8 padded rows; rows 1..7 stay exactly zero through every
    # matmul, so this equals the true vector norm.
    sigma = jnp.sum(u * wv)                             # u . (W v)
    # PyTorch parity: no epsilon guard on sigma (w / sigma would blow up there too).
    pl.debug_check(sigma != 0.0, "SpectralNorm: sigma == 0")
    inv_sigma_ref[...] = jnp.reshape(1.0 / sigma, (1, 1))
    u_out_ref[...] = u                                  # f32 state (PyTorch parity)
    v_out_ref[...] = v


def spectral_norm_stats(w_mat, u0):
    """w_mat: (cout, K) f32; u0: (cout,).  Returns (inv_sigma (1,1) f32, u_new, v_new)."""
    cout, k = w_mat.shape
    u_pad = jnp.zeros((SUBLANE, cout), jnp.float32).at[0].set(u0.astype(jnp.float32))
    inv_sigma, u_new, v_new = pl.pallas_call(
        _power_iter_kernel,
        out_shape=(
            jax.ShapeDtypeStruct((1, 1), jnp.float32),
            jax.ShapeDtypeStruct((SUBLANE, cout), jnp.float32),
            jax.ShapeDtypeStruct((SUBLANE, k), jnp.float32),
        ),
    )(w_mat, u_pad)
    return inv_sigma, u_new[0], v_new[0]


# ----------------------------------------------------------------------------
# Kernel 2: stride-1 conv as `kh` deep MXU contractions (K = kw*cin) per grid step,
# with 1/sigma + bias fused into the f32 epilogue.  One grid step = one H-tile of
# one batch image.
# ----------------------------------------------------------------------------
def conv2d_spectral(x, w_bar, bias, inv_sigma, *, pad=1, h_tile=8,
                    operand_dtype=jnp.bfloat16):
    """x: NCHW, w_bar: (cout, cin, kh, kw) UNSCALED, inv_sigma: (1,1) f32.  stride=1."""
    n, cin, h, w = x.shape
    cout, _, kh, kw = w_bar.shape
    dt = operand_dtype if operand_dtype is not None else x.dtype

    # --- activations: NCHW -> NHWC once, cast (bf16 MXU path by default), spatial pad ---
    xp = jnp.pad(jnp.transpose(x, (0, 2, 3, 1)).astype(dt),
                 ((0, 0), (pad, pad), (pad, pad), (0, 0)))
    hp, wp = h + 2 * pad, w + 2 * pad
    h_out, w_out = hp - (kh - 1), wp - (kw - 1)          # stride 1

    # --- width-unfold (wrapper-side repack): lane dim becomes kw*cin (dense vs. cin) ---
    # xcol[n, i, j, dw*cin + ci] = xp[n, i, j + dw, ci].  A kw-fold (~3x) activation
    # repack done once by fused XLA ops; in exchange every kw tap is absorbed into the
    # MXU contraction and no sublane-unaligned width slices are needed in VMEM.
    xcol = jnp.stack([xp[:, :, dw:dw + w_out, :] for dw in range(kw)], axis=3)
    xcol = xcol.reshape(n, hp, w_out, kw * cin)

    # --- H-tile grid axis with a (kh-1)-row halo; halo rows are duplicated wrapper-side
    #     ((kh-1)/h_tile overhead) so plain Blocked BlockSpecs express the overlap.
    if h_out % h_tile != 0:
        h_tile = h_out    # TODO(synk): ragged last tile when h_tile does not divide h_out
    n_t = h_out // h_tile
    tiles = jnp.stack([xcol[:, t * h_tile: t * h_tile + h_tile + kh - 1]
                       for t in range(n_t)], axis=1)     # (n, n_t, h_tile+kh-1, w_out, kw*cin)
    # Pre-flatten (H, W): the in-kernel tap windows become static, sublane-aligned 2-D
    # slices (start = dh*w_out; w_out % 8 == 0 keeps them tile-aligned) and no reshape
    # ever happens inside the kernel.
    m_in = (h_tile + kh - 1) * w_out
    m_out = h_tile * w_out
    tiles = tiles.reshape(n, n_t, m_in, kw * cin)

    # --- weight: OIHW -> (kh, kw*cin, cout), matching xcol's (dw, ci) flattening ---
    # Small cout stays UNPADDED: only the real channels are stored (masked vst) instead
    # of a 16x lane-padded HBM writeback; lane-pad only for layers with cout >= 128.
    w2 = jnp.transpose(w_bar, (2, 3, 1, 0)).reshape(kh, kw * cin, cout).astype(dt)
    bias2 = bias.astype(jnp.float32).reshape(1, cout)
    kwc = kw * cin

    def kernel(inv_sigma_ref, x_ref, w_ref, b_ref, o_ref):
        # x_ref: (m_in, kwc)   w_ref: (kh, kwc, cout)   b_ref: (1, cout)   o_ref: (m_out, cout)
        inv_s = inv_sigma_ref[0, 0]                      # cheap SMEM scalar read
        acc = jnp.zeros((m_out, cout), jnp.float32)      # <= ~16 vregs at the default h_tile
        for dh in range(kh):                             # static unroll: kh MXU matmuls, K = kw*cin
            lhs = x_ref[dh * w_out: dh * w_out + m_out, :]   # sublane-aligned static slice
            acc = acc + jnp.dot(lhs, w_ref[dh], preferred_element_type=jnp.float32)
        # Fused 1/sigma + bias epilogue in f32; the weight itself is never rescaled.
        o_ref[...] = (acc * inv_s + b_ref[...]).astype(o_ref.dtype)

    itemsize = jnp.dtype(dt).itemsize
    cost = pl.CostEstimate(                              # true (unpadded) sizes
        flops=2 * n * h_out * w_out * kh * kw * cin * cout,
        transcendentals=0,
        bytes_accessed=(tiles.size * itemsize + w2.size * itemsize + bias2.size * 4 + 4
                        + n * h_out * w_out * cout * jnp.dtype(x.dtype).itemsize),
    )

    out = pl.pallas_call(
        kernel,
        out_shape=jax.ShapeDtypeStruct((n, n_t, m_out, cout), x.dtype),
        grid=(n, n_t),                                   # n * n_t >= 2 parallel steps
        in_specs=[
            pl.BlockSpec(memory_space=pltpu.MemorySpace.SMEM),                  # inv_sigma
            pl.BlockSpec((None, None, m_in, kwc), lambda i, t: (i, t, 0, 0)),   # image H-tile
            pl.BlockSpec((kh, kwc, cout), lambda i, t: (0, 0, 0)),              # resident W
            pl.BlockSpec((1, cout), lambda i, t: (0, 0)),                       # resident bias
        ],
        out_specs=pl.BlockSpec((None, None, m_out, cout), lambda i, t: (i, t, 0, 0)),
        compiler_params=pltpu.CompilerParams(
            # Both grid axes independent -> shardable across the two v7x TensorCores.
            dimension_semantics=("parallel", "parallel"),
            # Explicit scoped-VMEM budget (fits v5e/v6e 128 MiB and v7x 64 MiB physical);
            # h_tile must keep 2x(input tile) + 2x(output tile) + resident W under this.
            vmem_limit_bytes=32 * 1024 * 1024),
        cost_estimate=cost,
    )(inv_sigma, tiles, w2, bias2)

    # (n, n_t, h_tile*w_out, cout) -> (n, h_out, w_out, cout) -> NCHW
    out = out.reshape(n, h_out, w_out, cout)
    return jnp.transpose(out, (0, 3, 1, 2))


# ----------------------------------------------------------------------------
# SpectralNorm(Conv2d).forward equivalent
# ----------------------------------------------------------------------------
def spectral_norm_conv_forward(x, w_bar, bias, u0, *, pad=1, h_tile=8,
                               operand_dtype=jnp.bfloat16):
    """Returns (y, u_new, v_new); u_new/v_new are the updated power-iteration buffers."""
    cout = w_bar.shape[0]
    w_mat = w_bar.reshape(cout, -1).astype(jnp.float32)  # same flattening as w.view(h, -1)
    inv_sigma, u_new, v_new = spectral_norm_stats(w_mat, u0)
    y = conv2d_spectral(x, w_bar, bias, inv_sigma, pad=pad, h_tile=h_tile,
                        operand_dtype=operand_dtype)
    return y, u_new, v_new


if __name__ == "__main__":
    key = jax.random.PRNGKey(0)
    kx, kwgt, kb, ku = jax.random.split(key, 4)

    # SpectralNorm(nn.Conv2d(4, 8, kernel_size=3, stride=1, padding=1))
    N, Cin, H, W = 2, 4, 16, 16
    Cout, KH, KW = 8, 3, 3

    x = jax.random.normal(kx, (N, Cin, H, W), jnp.float32)
    w_bar = 0.1 * jax.random.normal(kwgt, (Cout, Cin, KH, KW), jnp.float32)
    bias = 0.1 * jax.random.normal(kb, (Cout,), jnp.float32)
    u0 = jax.random.normal(ku, (Cout,), jnp.float32)
    u0 = u0 / (jnp.linalg.norm(u0) + EPS)                # l2normalize(u) from _make_params

    fwd = jax.jit(spectral_norm_conv_forward,
                  static_argnames=("pad", "h_tile", "operand_dtype"))
    y, u_new, v_new = fwd(x, w_bar, bias, u0)            # bf16 MXU operands by default
    y = jax.block_until_ready(y)

    # ---- pure-JAX references mirroring the PyTorch module ----
    w_mat = w_bar.reshape(Cout, -1)
    v_r = w_mat.T @ u0
    v_r = v_r / (jnp.linalg.norm(v_r) + EPS)
    u_r = w_mat @ v_r
    u_r = u_r / (jnp.linalg.norm(u_r) + EPS)
    sigma_r = u_r @ (w_mat @ v_r)

    def conv_ref(xx, ww):
        return jax.lax.conv_general_dilated(
            xx, ww / sigma_r, window_strides=(1, 1), padding=((1, 1), (1, 1)),
            dimension_numbers=("NCHW", "OIHW", "NCHW"),
        ) + bias.reshape(1, Cout, 1, 1)

    # Strict check vs a reference using the same bf16-rounded operands (isolates the kernel).
    xb = x.astype(jnp.bfloat16).astype(jnp.float32)
    wb = w_bar.astype(jnp.bfloat16).astype(jnp.float32)
    y_ref_bf16 = conv_ref(xb, wb)
    # Looser check vs the pure-f32 PyTorch-parity reference (bf16 operand rounding only).
    y_ref_f32 = conv_ref(x, w_bar)

    assert y.shape == (N, Cout, H, W)
    assert jnp.allclose(y, y_ref_bf16, atol=2e-3, rtol=2e-3), "conv output mismatch (bf16 ref)"
    assert jnp.allclose(y, y_ref_f32, atol=5e-2, rtol=5e-2), "conv output mismatch (f32 ref)"
    assert jnp.allclose(u_new, u_r, atol=2e-3), "u mismatch"
    assert jnp.allclose(v_new, v_r, atol=2e-3), "v mismatch"
    print("KERNEL_OK")
</pallas_src>

<mosaic_0001>
module attributes {stable_mosaic.version = 11 : i64} {
  func.func @_power_iter_kernel(%arg0: memref<8x36xf32, #tpu.memory_space<vmem>>, %arg1: memref<8x8xf32, #tpu.memory_space<vmem>>, %arg2: memref<1x1xf32, #tpu.memory_space<vmem>>, %arg3: memref<8x8xf32, #tpu.memory_space<vmem>>, %arg4: memref<8x36xf32, #tpu.memory_space<vmem>>) attributes {dimension_semantics = [], scalar_prefetch = 0 : i64, scratch_operands = 0 : i64, tpu.core_type = #tpu.core_type<tc>} {
    %c0 = arith.constant 0 : index
    %c0_0 = arith.constant 0 : index
    %0 = vector.load %arg0[%c0, %c0_0] : memref<8x36xf32, #tpu.memory_space<vmem>>, vector<8x36xf32>
    %c0_1 = arith.constant 0 : index
    %c0_2 = arith.constant 0 : index
    %1 = vector.load %arg1[%c0_1, %c0_2] : memref<8x8xf32, #tpu.memory_space<vmem>>, vector<8x8xf32>
    %cst = arith.constant dense<0.000000e+00> : vector<8x36xf32>
    %2 = tpu.matmul %1, %0, %cst {dimension_numbers = #tpu.dot_dimension_numbers<[1], [0], [0], [1], [0, 0, 1, 1], [], []>} : vector<8x8xf32>, vector<8x36xf32>, vector<8x36xf32> -> vector<8x36xf32>
    %3 = arith.mulf %2, %2 : vector<8x36xf32>
    %4 = vector.shape_cast %3 : vector<8x36xf32> to vector<1x8x36xf32>
    %cst_3 = arith.constant dense<0.000000e+00> : vector<1xf32>
    %5 = vector.multi_reduction <add>, %4, %cst_3 [1, 2] : vector<1x8x36xf32> to vector<1xf32>
    %6 = vector.shape_cast %5 : vector<1xf32> to vector<1x1x1xf32>
    %7 = vector.extract %6[0, 0, 0] : f32 from vector<1x1x1xf32>
    %cst_4 = arith.constant 9.99999996E-13 : f32
    %8 = arith.addf %7, %cst_4 : f32
    %9 = math.rsqrt %8 : f32
    %10 = vector.broadcast %9 : f32 to vector<8x36xf32>
    %11 = arith.mulf %2, %10 : vector<8x36xf32>
    %cst_5 = arith.constant dense<0.000000e+00> : vector<8x8xf32>
    %12 = tpu.matmul %11, %0, %cst_5 {dimension_numbers = #tpu.dot_dimension_numbers<[1], [1], [0], [0], [0, 0, 1, 0], [], []>} : vector<8x36xf32>, vector<8x36xf32>, vector<8x8xf32> -> vector<8x8xf32>
    %13 = arith.mulf %12, %12 : vector<8x8xf32>
    %14 = vector.shape_cast %13 : vector<8x8xf32> to vector<1x8x8xf32>
    %cst_6 = arith.constant dense<0.000000e+00> : vector<1xf32>
    %15 = vector.multi_reduction <add>, %14, %cst_6 [1, 2] : vector<1x8x8xf32> to vector<1xf32>
    %16 = vector.shape_cast %15 : vector<1xf32> to vector<1x1x1xf32>
    %17 = vector.extract %16[0, 0, 0] : f32 from vector<1x1x1xf32>
    %cst_7 = arith.constant 9.99999996E-13 : f32
    %18 = arith.addf %17, %cst_7 : f32
    %19 = math.rsqrt %18 : f32
    %20 = vector.broadcast %19 : f32 to vector<8x8xf32>
    %21 = arith.mulf %12, %20 : vector<8x8xf32>
    %22 = arith.mulf %21, %12 : vector<8x8xf32>
    %23 = vector.shape_cast %22 : vector<8x8xf32> to vector<1x8x8xf32>
    %cst_8 = arith.constant dense<0.000000e+00> : vector<1xf32>
    %24 = vector.multi_reduction <add>, %23, %cst_8 [1, 2] : vector<1x8x8xf32> to vector<1xf32>
    %25 = vector.shape_cast %24 : vector<1xf32> to vector<1x1x1xf32>
    %26 = vector.extract %25[0, 0, 0] : f32 from vector<1x1x1xf32>
    %cst_9 = arith.constant 0.000000e+00 : f32
    %27 = arith.cmpf one, %26, %cst_9 : f32
    %true = arith.constant true
    %28 = arith.xori %27, %true : i1
    %false = arith.constant false
    %29 = arith.ori %false, %28 : i1
    %false_10 = arith.constant false
    %c1_i32 = arith.constant 1 : i32
    %c-1_i32 = arith.constant -1 : i32
    %30 = arith.select %false_10, %c-1_i32, %c1_i32 : i32
    %cst_11 = arith.constant 1.000000e+00 : f32
    %31 = arith.divf %cst_11, %26 : f32
    %32 = vector.broadcast %31 : f32 to vector<1x1xf32>
    %c0_12 = arith.constant 0 : index
    %c0_13 = arith.constant 0 : index
    %33 = vector.load %arg2[%c0_12, %c0_13] : memref<1x1xf32, #tpu.memory_space<vmem>>, vector<1x1xf32>
    tpu.vector_store %arg2[%c0_12, %c0_13], %32 {strides = array<i32>} : memref<1x1xf32, #tpu.memory_space<vmem>>, vector<1x1xf32>,
    %c0_14 = arith.constant 0 : index
    %c0_15 = arith.constant 0 : index
    %34 = vector.load %arg3[%c0_14, %c0_15] : memref<8x8xf32, #tpu.memory_space<vmem>>, vector<8x8xf32>
    tpu.vector_store %arg3[%c0_14, %c0_15], %21 {strides = array<i32>} : memref<8x8xf32, #tpu.memory_space<vmem>>, vector<8x8xf32>,
    %c0_16 = arith.constant 0 : index
    %c0_17 = arith.constant 0 : index
    %35 = vector.load %arg4[%c0_16, %c0_17] : memref<8x36xf32, #tpu.memory_space<vmem>>, vector<8x36xf32>
    tpu.vector_store %arg4[%c0_16, %c0_17], %11 {strides = array<i32>} : memref<8x36xf32, #tpu.memory_space<vmem>>, vector<8x36xf32>,
    return
  }
}

module attributes {stable_mosaic.version = 11 : i64} {
  func.func @kernel(%arg0: i32, %arg1: i32, %arg2: memref<1x1xf32, #tpu.memory_space<smem>>, %arg3: memref<1x1x160x12xbf16, #tpu.memory_space<vmem>>, %arg4: memref<3x12x8xbf16, #tpu.memory_space<vmem>>, %arg5: memref<1x8xf32, #tpu.memory_space<vmem>>, %arg6: memref<1x1x128x8xf32, #tpu.memory_space<vmem>>) attributes {dimension_semantics = [#tpu.dimension_semantics<parallel>, #tpu.dimension_semantics<parallel>], iteration_bounds = array<i64: 2, 2>, scalar_prefetch = 0 : i64, scratch_operands = 0 : i64, tpu.core_type = #tpu.core_type<tc>, window_params = [{transform_indices = @transform_0, window_bounds = array<i64: 1, 1>}, {transform_indices = @transform_1, window_bounds = array<i64: 1, 1, 160, 12>}, {pipeline_mode = #tpu.pipeline_mode<synchronous>, transform_indices = @transform_2, window_bounds = array<i64: 3, 12, 8>}, {pipeline_mode = #tpu.pipeline_mode<synchronous>, transform_indices = @transform_3, window_bounds = array<i64: 1, 8>}, {transform_indices = @transform_4, window_bounds = array<i64: 1, 1, 128, 8>}]} {
    %c0 = arith.constant 0 : index
    %c0_0 = arith.constant 0 : index
    %0 = memref.load %arg2[%c0, %c0_0] : memref<1x1xf32, #tpu.memory_space<smem>>
    %cst = arith.constant 0.000000e+00 : f32
    %1 = vector.broadcast %cst : f32 to vector<128x8xf32>
    %c0_1 = arith.constant 0 : index
    %c0_2 = arith.constant 0 : index
    %c0_3 = arith.constant 0 : index
    %c0_4 = arith.constant 0 : index
    %2 = vector.load %arg3[%c0_1, %c0_2, %c0_3, %c0_4] : memref<1x1x160x12xbf16, #tpu.memory_space<vmem>>, vector<1x1x128x12xbf16>
    %3 = vector.shape_cast %2 : vector<1x1x128x12xbf16> to vector<128x12xbf16>
    %c0_5 = arith.constant 0 : index
    %c0_6 = arith.constant 0 : index
    %c0_7 = arith.constant 0 : index
    %4 = vector.load %arg4[%c0_5, %c0_6, %c0_7] : memref<3x12x8xbf16, #tpu.memory_space<vmem>>, vector<1x12x8xbf16>
    %5 = vector.shape_cast %4 : vector<1x12x8xbf16> to vector<12x8xbf16>
    %cst_8 = arith.constant dense<0.000000e+00> : vector<128x8xf32>
    %6 = tpu.matmul %3, %5, %cst_8 {dimension_numbers = #tpu.dot_dimension_numbers<[1], [0], [0], [1], [0, 0, 1, 1], [], []>} : vector<128x12xbf16>, vector<12x8xbf16>, vector<128x8xf32> -> vector<128x8xf32>
    %7 = arith.addf %1, %6 : vector<128x8xf32>
    %c0_9 = arith.constant 0 : index
    %c0_10 = arith.constant 0 : index
    %c16 = arith.constant 16 : index
    %c0_11 = arith.constant 0 : index
    %8 = vector.load %arg3[%c0_9, %c0_10, %c16, %c0_11] : memref<1x1x160x12xbf16, #tpu.memory_space<vmem>>, vector<1x1x128x12xbf16>
    %9 = vector.shape_cast %8 : vector<1x1x128x12xbf16> to vector<128x12xbf16>
    %c1 = arith.constant 1 : index
    %c0_12 = arith.constant 0 : index
    %c0_13 = arith.constant 0 : index
    %10 = vector.load %arg4[%c1, %c0_12, %c0_13] : memref<3x12x8xbf16, #tpu.memory_space<vmem>>, vector<1x12x8xbf16>
    %11 = vector.shape_cast %10 : vector<1x12x8xbf16> to vector<12x8xbf16>
    %cst_14 = arith.constant dense<0.000000e+00> : vector<128x8xf32>
    %12 = tpu.matmul %9, %11, %cst_14 {dimension_numbers = #tpu.dot_dimension_numbers<[1], [0], [0], [1], [0, 0, 1, 1], [], []>} : vector<128x12xbf16>, vector<12x8xbf16>, vector<128x8xf32> -> vector<128x8xf32>
    %13 = arith.addf %7, %12 : vector<128x8xf32>
    %c0_15 = arith.constant 0 : index
    %c0_16 = arith.constant 0 : index
    %c32 = arith.constant 32 : index
    %c0_17 = arith.constant 0 : index
    %14 = vector.load %arg3[%c0_15, %c0_16, %c32, %c0_17] : memref<1x1x160x12xbf16, #tpu.memory_space<vmem>>, vector<1x1x128x12xbf16>
    %15 = vector.shape_cast %14 : vector<1x1x128x12xbf16> to vector<128x12xbf16>
    %c2 = arith.constant 2 : index
    %c0_18 = arith.constant 0 : index
    %c0_19 = arith.constant 0 : index
    %16 = vector.load %arg4[%c2, %c0_18, %c0_19] : memref<3x12x8xbf16, #tpu.memory_space<vmem>>, vector<1x12x8xbf16>
    %17 = vector.shape_cast %16 : vector<1x12x8xbf16> to vector<12x8xbf16>
    %cst_20 = arith.constant dense<0.000000e+00> : vector<128x8xf32>
    %18 = tpu.matmul %15, %17, %cst_20 {dimension_numbers = #tpu.dot_dimension_numbers<[1], [0], [0], [1], [0, 0, 1, 1], [], []>} : vector<128x12xbf16>, vector<12x8xbf16>, vector<128x8xf32> -> vector<128x8xf32>
    %19 = arith.addf %13, %18 : vector<128x8xf32>
    %20 = vector.broadcast %0 : f32 to vector<128x8xf32>
    %21 = arith.mulf %19, %20 : vector<128x8xf32>
    %c0_21 = arith.constant 0 : index
    %c0_22 = arith.constant 0 : index
    %22 = vector.load %arg5[%c0_21, %c0_22] : memref<1x8xf32, #tpu.memory_space<vmem>>, vector<1x8xf32>
    %23 = vector.broadcast %22 : vector<1x8xf32> to vector<128x8xf32>
    %24 = arith.addf %21, %23 : vector<128x8xf32>
    %c0_23 = arith.constant 0 : index
    %c0_24 = arith.constant 0 : index
    %c0_25 = arith.constant 0 : index
    %c0_26 = arith.constant 0 : index
    %25 = vector.load %arg6[%c0_23, %c0_24, %c0_25, %c0_26] : memref<1x1x128x8xf32, #tpu.memory_space<vmem>>, vector<1x1x128x8xf32>
    %26 = vector.shape_cast %25 : vector<1x1x128x8xf32> to vector<128x8xf32>
    %27 = vector.shape_cast %24 : vector<128x8xf32> to vector<1x1x128x8xf32>
    tpu.vector_store %arg6[%c0_23, %c0_24, %c0_25, %c0_26], %27 {strides = array<i32>} : memref<1x1x128x8xf32, #tpu.memory_space<vmem>>, vector<1x1x128x8xf32>,
    return
  }
  func.func @transform_0(%arg0: i32, %arg1: i32) -> (i32, i32) {
    %c0_i32 = arith.constant 0 : i32
    %c0_i32_0 = arith.constant 0 : i32
    %c0_i32_1 = arith.constant 0 : i32
    return %c0_i32, %c0_i32_0 : i32, i32
  }
  func.func @transform_1(%arg0: i32, %arg1: i32) -> (i32, i32, i32, i32) {
    %c0_i32 = arith.constant 0 : i32
    %c0_i32_0 = arith.constant 0 : i32
    %c0_i32_1 = arith.constant 0 : i32
    return %arg0, %arg1, %c0_i32, %c0_i32_0 : i32, i32, i32, i32
  }
  func.func @transform_2(%arg0: i32, %arg1: i32) -> (i32, i32, i32) {
    %c0_i32 = arith.constant 0 : i32
    %c0_i32_0 = arith.constant 0 : i32
    %c0_i32_1 = arith.constant 0 : i32
    %c0_i32_2 = arith.constant 0 : i32
    return %c0_i32, %c0_i32_0, %c0_i32_1 : i32, i32, i32
  }
  func.func @transform_3(%arg0: i32, %arg1: i32) -> (i32, i32) {
    %c0_i32 = arith.constant 0 : i32
    %c0_i32_0 = arith.constant 0 : i32
    %c0_i32_1 = arith.constant 0 : i32
    return %c0_i32, %c0_i32_0 : i32, i32
  }
  func.func @transform_4(%arg0: i32, %arg1: i32) -> (i32, i32, i32, i32) {
    %c0_i32 = arith.constant 0 : i32
    %c0_i32_0 = arith.constant 0 : i32
    %c0_i32_1 = arith.constant 0 : i32
    return %arg0, %arg1, %c0_i32, %c0_i32_0 : i32, i32, i32, i32
  }
}

</mosaic_0001>

<bundles_post_ra>
// kernel: spectral_norm_conv_forward.2
= control target key start
LH: loop header
LB: loop body
LE: loop exit
PB: predicated region body
PF: predicated region fallthrough
CT: control target
= control target key end

     0   :  { %vm17_vm0 = vcmask 64512   ;;  %v305_v2 = vmov 0.0   ;;  %vm306_vm1 = vmmov 0   ;;  %s365_s0 = inlined_call_operand.vmem [shape: f32[8,36], index: 0, kind: input, shape index: {}]   ;;  %s366_s1 = inlined_call_operand.vmem [shape: f32[8,8], index: 1, kind: input, shape index: {}]   ;;  %s367_s2 = inlined_call_operand.hbm [shape: f32[1,1], index: 2, kind: output, shape index: {0}]   ;;  %s368_s3 = inlined_call_operand.vmem [shape: f32[8,8], index: 3, kind: output, shape index: {1}]   ;;  %s369_s4 = inlined_call_operand.vmem [shape: f32[8,36], index: 4, kind: output, shape index: {2}]  }
   0x1   :  { %v15_v0 = vld [vmem:[%s365_s0] sm:$0xff]  ;;  %250 = vmatprep.subr.mxu0 %v305_v2  ;;  %252 = vmatprep.mubr.msk.f32.mxu0 %vm306_vm1, %v305_v2 }
   0x2   :  { %v16_v1 = vld [vmem:[%s366_s1] sm:$0xff] }
   0x3   :  { %10 = vsyncpa [#allocation3], 0  ;;  %251 = vmatpush3.msra.mxu0 %v15_v0  ;;  %255 = vmatprep.subr.mxu1 %v305_v2  ;;  %vm92_vm2 = vcmask 293888   ;;  %s307_s27 = smov [#allocation2]   ;;  %vm217_vm3 = vcmask 0  }
   0x4   :  { %253 = vmatmul.mubr.msk.f32.vlgmr.msra.gmra.mrb[0].mxu0 %vm17_vm0, %v16_v1  ;;  %257 = vmatprep.mubr.msk.f32.mxu1 %vm306_vm1, %v305_v2  ;;  %s227_s28 = sshll.u32 %s307_s27, 4  ;;  %s228_s28 = int_to_ptr.vmem [resolvable:$true] %s227_s28 }
   0x5   :  { %256 = vmatpush3.xpose.msk.msra.mxu1 %vm92_vm2, %v15_v0  ;;  %s281_s29 = scalar_lea.vmem %s228_s28, 16  ;;  %s285_s30 = scalar_lea.vmem %s228_s28, 32 }
   0x6   :  { %p282_p0 = scmp.ne.s32.totalorder %s228_s28, %s281_s29  ;;  %p286_p1 = scmp.lt.s32.totalorder %s228_s28, %s228_s28 }
   0x7   :  { %p287_p2 = scmp.lt.s32.totalorder %s285_s30, %s281_s29 }
   0x9   :  { %p288_p3 = por %p287_p2, %p286_p1 }
   0xb   :  { %p289_p4 = pnand %p288_p3, %p282_p0 }
  0xd7   :  { %v87_v3 = vpop.f32.mrb[0].mxu0 }
  0xd8   :  { %v254_v4 = vpop.f32.mrb[1].mxu0  ;;  %v91_v5 = vmul.f32 %v87_v3, %v87_v3 }
  0xda   :  { %v93_v6 = vsel %vm92_vm2, %v91_v5, 0.0 }
  0xdb   :  { %94 = vadd.xlane.f32.xlu0 %v93_v6 }
 0x168   :  { %v95_v7 = vpop.xlane.xlu0 %94 }
 0x169   :  { %v96_v8 = vrot.slane %v95_v7, 4 }
 0x16b   :  { %v97_v9 = vadd.f32 %v96_v8, %v95_v7 }
 0x16d   :  { %v98_v10 = vrot.slane %v97_v9, 2 }
 0x16f   :  { %v99_v11 = vadd.f32 %v98_v10, %v97_v9 }
 0x171   :  { %v100_v12 = vrot.slane %v99_v11, 1 }
 0x173   :  { %v101_v13 = vadd.f32 %v100_v12, %v99_v11 }
 0x175   :  { %260 = vpush %v101_v13 }
 0x1a6   :  { %s261_s0 = spop %260 }
 0x1a7   :  { %s103_s1 = sadd.f32 1e-12, %s261_s0 }
 0x1a9   :  { %v104_v14 = vstv %s103_s1 }
 0x1aa   :  { %275 = vrsqrt.f32 %v104_v14 }
 0x1b4   :  { %v276_v15 = vpop.eup %275 }
 0x1b5   :  { %262 = vpush %v276_v15 }
 0x1e6   :  { %s263_s19 = spop %262 }
 0x1e7   :  { %v107_v16 = vstv %s263_s19 }
 0x1e8   :  { %v108_v17 = vmul.f32 %v107_v16, %v87_v3 }
 0x1ea   :  { %220 = vst.msk [vmem:[%s369_s4] sm:$0xff] %vm92_vm2, %v108_v17  ;;  %258 = vmatmul.mubr.msk.f32.vlgmr.msra.gmra.mrb[0].mxu1 %vm92_vm2, %v108_v17 }
 0x2bd   :  { %v181_v18 = vpop.f32.mrb[0].mxu1 }
 0x2be   :  { %v259_v19 = vpop.f32.mrb[1].mxu1  ;;  %v185_v20 = vmul.f32 %v181_v18, %v181_v18 }
 0x2c0   :  { %v186_v21 = vsel %vm17_vm0, %v185_v20, 0.0 }
 0x2c1   :  { %187 = vadd.xlane.f32.xlu0 %v186_v21 }
 0x34e   :  { %v188_v22 = vpop.xlane.xlu0 %187 }
 0x34f   :  { %v189_v23 = vrot.slane %v188_v22, 4 }
 0x351   :  { %v190_v24 = vadd.f32 %v189_v23, %v188_v22 }
 0x353   :  { %v191_v25 = vrot.slane %v190_v24, 2 }
 0x355   :  { %v192_v26 = vadd.f32 %v191_v25, %v190_v24 }
 0x357   :  { %v193_v27 = vrot.slane %v192_v26, 1 }
 0x359   :  { %v194_v28 = vadd.f32 %v193_v27, %v192_v26 }
 0x35b   :  { %264 = vpush %v194_v28 }
 0x38c   :  { %s265_s22 = spop %264 }
 0x38d   :  { %s196_s23 = sadd.f32 1e-12, %s265_s22 }
 0x38f   :  { %v197_v29 = vstv %s196_s23 }
 0x390   :  { %277 = vrsqrt.f32 %v197_v29 }
 0x39a   :  { %v278_v30 = vpop.eup %277 }
 0x39b   :  { %266 = vpush %v278_v30 }
 0x3cc   :  { %s267_s4 = spop %266 }
 0x3cd   :  { %v200_v31 = vstv %s267_s4 }
 0x3ce   :  { %v201_v32 = vmul.f32 %v200_v31, %v181_v18 }
 0x3d0   :  { %219 = vst.msk [vmem:[%s368_s3] sm:$0xff] %vm17_vm0, %v201_v32  ;;  %v202_v33 = vmul.f32 %v201_v32, %v181_v18 }
 0x3d2   :  { %v203_v34 = vsel %vm17_vm0, %v202_v33, 0.0 }
 0x3d3   :  { %204 = vadd.xlane.f32.xlu1 %v203_v34 }
 0x460   :  { %v205_v35 = vpop.xlane.xlu1 %204 }
 0x461   :  { %v206_v36 = vrot.slane %v205_v35, 4 }
 0x463   :  { %v207_v37 = vadd.f32 %v206_v36, %v205_v35 }
 0x465   :  { %v208_v38 = vrot.slane %v207_v37, 2 }
 0x467   :  { %v209_v39 = vadd.f32 %v208_v38, %v207_v37 }
 0x469   :  { %v210_v40 = vrot.slane %v209_v39, 1 }
 0x46b   :  { %v211_v41 = vadd.f32 %v210_v40, %v209_v39 }
 0x46d   :  { %268 = vpush %v211_v41 }
 0x49e   :  { %s269_s26 = spop %268 }
 0x49f   :  { %v213_v42 = vstv %s269_s26 }
 0x4a0   :  { %279 = vrcp.f32 %v213_v42 }
 0x4aa   :  { %v280_v43 = vpop.eup %279 }
 0x4ab   :  { %270 = vpush %v280_v43 }
 0x4dc   :  { %s271_s3 = spop %270 }
 0x4dd   :  { %v216_v44 = vstv %s271_s3 }
 0x4de   :  { %218 = vst.msk [vmem:[#allocation2] sm:$0x1] %vm217_vm3, %v216_v44 }
 0x4df   :  { %292 = shalt.err (!%p289_p4)
}
 0x4e0   :  { %s293_s7 = scalar_lea.hbm %s367_s2, 16 }
 0x4e1   :  { %p294_p5 = scmp.ne.s32.totalorder %s367_s2, %s293_s7  ;;  %p297_p6 = scmp.lt.u32.totalorder %s293_s7, %s367_s2 }
 0x4e3   :  { %p299_p7 = pnand %p297_p6, %p294_p5 }
 0x4e5   :  { %302 = shalt.err (!%p299_p7)
}
 0x4e6   :  { %230 = dma.vmem_to_hbm [thread:$0]  %s228_s28, 16, %s367_s2, [#allocation3]  }
 0x4e7   :  { %303 = dma.done.wait [#allocation3], 16  }
 0x4e8   :  { %304 = vsyncadd [#allocation3], 4294967280 }
 0x4e9   :  { %242 = vsyncpa [#allocation3], 1 }

// kernel: spectral_norm_conv_forward.3
= control target key start
LH: loop header
LB: loop body
LE: loop exit
PB: predicated region body
PF: predicated region fallthrough
CT: control target
= control target key end

     0   :  { %s1209_s17 = smov 0   ;;  %s1211_s18 = smov 0   ;;  %s1400_s0 = inlined_call_operand.<no memory space> [shape: f32[1,1], index: 0, kind: input, shape index: {}]   ;;  %s1401_s1 = inlined_call_operand.vmem [shape: bf16[2,2,160,12], index: 1, kind: input, shape index: {}]   ;;  %s1402_s2 = inlined_call_operand.vmem [shape: bf16[3,12,8], index: 2, kind: input, shape index: {}]   ;;  %s1403_s3 = inlined_call_operand.vmem [shape: f32[1,8], index: 3, kind: input, shape index: {}]   ;;  %s1404_s4 = inlined_call_operand.vmem [shape: f32[2,2,128,8], index: 4, kind: output, shape index: {}]  }
   0x1   :  { %9 = sst [smem:[#allocation2]] %s1400_s0  ;;  %s1213_s19 = smov 0  }
   0x2   :  { %s1215_s20 = smov 0   ;;  %s1217_s21 = smov 0  }
   0x3 LB: > { %s24_s0 = sadd.s32 1, %s1171_s19  ;;  %s27_s22 = sadd.s32 1, %s1175_s20  ;;  %s1179_s21 = sphi %s1217_s21, %s15_s21   ;;  %s1175_s20 = sphi %s1215_s20, %s1408_s20   ;;  %s1171_s19 = sphi %s1213_s19, %s1407_s19   ;;  %s1167_s18 = sphi %s1211_s18, %s1406_s18   ;;  %s1163_s17 = sphi %s1209_s17, %s1405_s17  }
   0x4   : > { %p25_p0 = scmp.ge.s32.totalorder %s24_s0, 2  ;;  %p904_p1 = scmp.ge.s32.totalorder %s1179_s21, 1 }
   0x5   : > { %p183_p2 = scmp.lt.s32.totalorder %s1179_s21, 5 }
   0x6   : > { %s1410_s0 = smov (%p25_p0, %s24_s0), 0  ;;  %s1412_s22 = smov (!%p25_p0, %s27_s22), %s1175_s20 }
   0x7   : > { %p184_p3 = pnand %p904_p1, %p183_p2  ;;  %p29_p4 = scmp.ge.s32.totalorder %s1412_s22, 2 }
   0x8   : > { %v1121_v0 = vld [vmem:[%s1402_s2 + $0x8] sm:$0x3f] (!%p184_p3)   ;;  %vm330_vm0 = vcmask (!%p184_p3), 1045504   ;;  %p217_p5 = scmp.lt.s32.totalorder (!%p184_p3), %s1167_s18, 1  ;;  %v1122_v1 = vld [vmem:[%s1402_s2] sm:$0x3f] (!%p184_p3)  }
   0x9   : > { %s1414_s22 = smov (%p29_p4, %s1412_s22), 0  ;;  %187 = sbr.rel (%p184_p3) target bundleno = 287 (0x11f), region = 36 }
   0xa   : > { %1075 = vmatprep.subr.msk.bf16.mxu1 (!%p184_p3), %vm330_vm0, %v1121_v0  ;;  %v332_v2 = vsel (!%p184_p3), %vm330_vm0, %v1121_v0, 0  ;;  %p219_p6 = scmp.lt.s32.totalorder (!%p184_p3), %s1163_s17, 1  ;;  %1076 = vmatprep.subr.msk.bf16.mxu0 (!%p184_p3), %vm330_vm0, %v1122_v1  ;;  %v445_v3 = vsel (!%p184_p3), %vm330_vm0, %v1122_v1, 0  ;;  %v1125_v4 = vld [vmem:[%s1402_s2 + $0x10] sm:$0x3f] (!%p184_p3)   ;;  %vm305_vm1 = vcmask (!%p184_p3), 97280  }
   0xb   : > { %988 = vmatpush3.bf16.msra.mxu1 (!%p184_p3), %v332_v2  ;;  %1006 = vmatpush3.bf16.msra.mxu0 (!%p184_p3), %v445_v3  ;;  %v633_v8 = vsel (!%p184_p3), %vm330_vm0, %v1125_v4, 0  ;;  %s236_s10 = sld [smem:[#allocation2]] (!%p184_p3)  ;;  %v1314_v35 = vld [vmem:[%s1403_s3] ss:$0 sm:$0xff] (!%p184_p3)  ;;  %vm788_vm2 = vcmask (!%p184_p3), 64512  }
   0xc   : > { %1077 = vmatprep.subr.msk.bf16.mxu1 (!%p184_p3), %vm330_vm0, %v1122_v1  ;;  %1078 = vmatprep.subr.msk.bf16.mxu0 (!%p184_p3), %vm330_vm0, %v1125_v4 }
  0x10   : > { %s1416_s18 = smov (!%p217_p5, %s1167_s18), 1  ;;  %s1418_s17 = smov (!%p219_p6, %s1163_s17), 1 }
  0x11   : > { %s1080_s29 = smul.u32 40, %s1416_s18  ;;  %s906_s11 = sshll.u32 %s1418_s17, 4  ;;  %v1309_v32 = vstv %s236_s10 }
  0x12   : > { %s1079_s30 = smul.u32 20, %s1418_s17  ;;  %s907_s12 = sshll.u32 %s1416_s18, 5 }
  0x13   : > { %s232_s13 = sadd.s32 %s907_s12, %s906_s11 }
  0x14   : > { %s223_s5 = sadd.s32 %s1080_s29, %s1079_s30  ;;  %s908_s14 = sshll.u32 %s232_s13, 3 }
  0x15   : > { %s905_s6 = sshll.u32 %s223_s5, 2  ;;  %s1320_s23 = scalar_lea.vmem %s1404_s4, %s908_s14 }
  0x16   : > { %s1263_s9 = scalar_lea.vmem %s1401_s1, %s905_s6 }
  0x17   : > { %v1123_v5 = vld [vmem:[%s1263_s9 + $0x8] sm:$0xff]   ;;  %v1124_v6 = vld [vmem:[%s1263_s9] sm:$0xff]   ;;  %v1126_v7 = vld [vmem:[%s1263_s9 + $0x10] sm:$0xff]  }
  0x18   : > { %989 = vmatprep.mubr.msk.bf16.mxu1 %vm305_vm1, %v1123_v5  ;;  %1007 = vmatprep.mubr.msk.bf16.mxu0 %vm305_vm1, %v1124_v6  ;;  %v1127_v9 = vld [vmem:[%s1263_s9 + $0x18] sm:$0xff]   ;;  %v1128_v10 = vld [vmem:[%s1263_s9 + $0x20] sm:$0xff]   ;;  %v1129_v11 = vld [vmem:[%s1263_s9 + $0x28] sm:$0xff]  }
  0x19   : > { %990 = vmatmul.mubr.msk.bf16.vlgmr.msra.gmra.mrb[0].mxu1 %vm305_vm1, %v1126_v7  ;;  %1008 = vmatmul.mubr.msk.bf16.vlgmr.msra.gmra.mrb[0].mxu0 %vm305_vm1, %v1123_v5  ;;  %v1130_v12 = vld [vmem:[%s1263_s9 + $0x10] sm:$0xff]   ;;  %v1132_v14 = vld [vmem:[%s1263_s9 + $0x18] sm:$0xff]   ;;  %v1134_v16 = vld [vmem:[%s1263_s9 + $0x20] sm:$0xff]  }
  0x1a   : > { %1042 = vmatpush3.bf16.msra.mxu1 %v445_v3  ;;  %1024 = vmatpush3.bf16.msra.mxu0 %v633_v8  ;;  %v1131_v13 = vld [vmem:[%s1263_s9 + $0x30] sm:$0xff]   ;;  %v1133_v15 = vld [vmem:[%s1263_s9 + $0x38] sm:$0xff]   ;;  %v1135_v17 = vld [vmem:[%s1263_s9 + $0x40] sm:$0xff]  }
  0x1b   : > { %993 = vmatprep.mubr.msk.bf16.mxu1 %vm305_vm1, %v1127_v9  ;;  %1011 = vmatprep.mubr.msk.bf16.mxu0 %vm305_vm1, %v1126_v7  ;;  %v1136_v18 = vld [vmem:[%s1263_s9 + $0x28] sm:$0xff]   ;;  %v1137_v19 = vld [vmem:[%s1263_s9 + $0x30] sm:$0xff]   ;;  %v1138_v20 = vld [vmem:[%s1263_s9 + $0x38] sm:$0xff]  }
  0x1c   : > { %v1139_v21 = vld [vmem:[%s1263_s9 + $0x40] sm:$0xff]   ;;  %v1140_v22 = vld [vmem:[%s1263_s9 + $0x48] sm:$0xff]  }
  0x21   : > { %994 = vmatmul.mubr.msk.bf16.gmra.mrb[4].mxu1 %vm305_vm1, %v1128_v10  ;;  %1012 = vmatmul.mubr.msk.bf16.gmra.mrb[4].mxu0 %vm305_vm1, %v1127_v9 }
  0x22   : > { %997 = vmatprep.mubr.msk.bf16.mxu1 %vm305_vm1, %v1129_v11  ;;  %1025 = vmatprep.mubr.msk.bf16.mxu0 %vm305_vm1, %v1130_v12 }
  0x29   : > { %998 = vmatmul.mubr.msk.bf16.gmra.mrb[8].mxu1 %vm305_vm1, %v1131_v13  ;;  %1026 = vmatmul.mubr.msk.bf16.vlgmr.msra.gmra.mrb[0].mxu0 %vm305_vm1, %v1132_v14 }
  0x2a   : > { %1001 = vmatprep.mubr.msk.bf16.mxu1 %vm305_vm1, %v1133_v15  ;;  %1029 = vmatprep.mubr.msk.bf16.mxu0 %vm305_vm1, %v1134_v16 }
  0x31   : > { %1002 = vmatmul.mubr.msk.bf16.gmra.mrb[12].mxu1 %vm305_vm1, %v1135_v17  ;;  %1030 = vmatmul.mubr.msk.bf16.gmra.mrb[4].mxu0 %vm305_vm1, %v1136_v18 }
  0x32   : > { %1015 = vmatprep.mubr.msk.bf16.mxu1 %vm305_vm1, %v1128_v10  ;;  %1033 = vmatprep.mubr.msk.bf16.mxu0 %vm305_vm1, %v1137_v19 }
  0x39   : > { %1016 = vmatmul.mubr.msk.bf16.vlgmr.msra.gmra.mrb[8].mxu1 %vm305_vm1, %v1129_v11  ;;  %1034 = vmatmul.mubr.msk.bf16.gmra.mrb[8].mxu0 %vm305_vm1, %v1138_v20 }
  0x3a   : > { %1019 = vmatprep.mubr.msk.bf16.mxu1 %vm305_vm1, %v1131_v13  ;;  %1037 = vmatprep.mubr.msk.bf16.mxu0 %vm305_vm1, %v1139_v21 }
  0x41   : > { %1020 = vmatmul.mubr.msk.bf16.gmra.mrb[12].mxu1 %vm305_vm1, %v1133_v15  ;;  %1038 = vmatmul.mubr.msk.bf16.gmra.mrb[12].mxu0 %vm305_vm1, %v1140_v22 }
  0xec   : > { %v991_v23 = vpop.f32.mrb[0].mxu1 }
  0xed   : > { %v368_v24 = vpop.f32.mrb[1].mxu1 }
  0xee   : > { %v992_v25 = vpop.f32.mrb[2].mxu1 }
  0xef   : > { %v371_v26 = vpop.f32.mrb[3].mxu1 }
  0xf4   : > { %v995_v27 = vpop.f32.mrb[4].mxu1 }
  0xf5   : > { %v384_v28 = vpop.f32.mrb[5].mxu1 }
  0xf6   : > { %v996_v29 = vpop.f32.mrb[6].mxu1 }
  0xf7   : > { %v387_v30 = vpop.f32.mrb[7].mxu1 }
  0xfc   : > { %v1027_v31 = vpop.f32.mrb[0].mxu0 }
  0xfd   : > { %v1043_v33 = vadd.f32 %v1027_v31, %v991_v23  ;;  %v669_v34 = vpop.f32.mrb[1].mxu0 }
  0xfe   : > { %v1044_v36 = vadd.f32 %v669_v34, %v368_v24  ;;  %v1028_v37 = vpop.f32.mrb[2].mxu0 }
  0xff   : > { %v751_v38 = vmul.f32 %v1043_v33, %v1309_v32  ;;  %v1045_v39 = vadd.f32 %v1028_v37, %v992_v25  ;;  %v672_v40 = vpop.f32.mrb[3].mxu0 }
 0x100   : > { %v749_v41 = vmul.f32 %v1044_v36, %v1309_v32  ;;  %v1046_v42 = vadd.f32 %v672_v40, %v371_v26 }
 0x101   : > { %v774_v43 = vadd.f32 %v1314_v35, %v751_v38  ;;  %v752_v44 = vmul.f32 %v1045_v39, %v1309_v32 }
 0x102   : > { %v772_v45 = vadd.f32 %v1314_v35, %v749_v41  ;;  %v750_v46 = vmul.f32 %v1046_v42, %v1309_v32 }
 0x103   : > { %791 = vst.msk [vmem:[%s1320_s23 + $0x10] sm:$0xff] %vm788_vm2, %v774_v43  ;;  %v775_v47 = vadd.f32 %v1314_v35, %v752_v44 }
 0x104   : > { %789 = vst.msk [vmem:[%s1320_s23] sm:$0xff] %vm788_vm2, %v772_v45  ;;  %v773_v48 = vadd.f32 %v1314_v35, %v750_v46  ;;  %v1031_v49 = vpop.f32.mrb[4].mxu0 }
 0x105   : > { %792 = vst.msk [vmem:[%s1320_s23 + $0x18] sm:$0xff] %vm788_vm2, %v775_v47  ;;  %v1047_v50 = vadd.f32 %v1031_v49, %v995_v27  ;;  %v685_v51 = vpop.f32.mrb[5].mxu0 }
 0x106   : > { %790 = vst.msk [vmem:[%s1320_s23 + $0x8] sm:$0xff] %vm788_vm2, %v773_v48  ;;  %v1048_v52 = vadd.f32 %v685_v51, %v384_v28  ;;  %v1032_v53 = vpop.f32.mrb[6].mxu0 }
 0x107   : > { %v755_v54 = vmul.f32 %v1047_v50, %v1309_v32  ;;  %v1049_v55 = vadd.f32 %v1032_v53, %v996_v29  ;;  %v688_v56 = vpop.f32.mrb[7].mxu0 }
 0x108   : > { %v753_v57 = vmul.f32 %v1048_v52, %v1309_v32  ;;  %v1050_v58 = vadd.f32 %v688_v56, %v387_v30 }
 0x109   : > { %v778_v59 = vadd.f32 %v1314_v35, %v755_v54  ;;  %v756_v60 = vmul.f32 %v1049_v55, %v1309_v32 }
 0x10a   : > { %v776_v61 = vadd.f32 %v1314_v35, %v753_v57  ;;  %v754_v62 = vmul.f32 %v1050_v58, %v1309_v32 }
 0x10b   : > { %795 = vst.msk [vmem:[%s1320_s23 + $0x30] sm:$0xff] %vm788_vm2, %v778_v59  ;;  %v779_v63 = vadd.f32 %v1314_v35, %v756_v60 }
 0x10c   : > { %793 = vst.msk [vmem:[%s1320_s23 + $0x20] sm:$0xff] %vm788_vm2, %v776_v61  ;;  %v777_v0 = vadd.f32 %v1314_v35, %v754_v62  ;;  %v1017_v1 = vpop.f32.mrb[8].mxu1  ;;  %v1035_v2 = vpop.f32.mrb[8].mxu0 }
 0x10d   : > { %796 = vst.msk [vmem:[%s1320_s23 + $0x38] sm:$0xff] %vm788_vm2, %v779_v63  ;;  %v1051_v3 = vadd.f32 %v1035_v2, %v1017_v1  ;;  %v513_v4 = vpop.f32.mrb[9].mxu1  ;;  %v701_v5 = vpop.f32.mrb[9].mxu0 }
 0x10e   : > { %794 = vst.msk [vmem:[%s1320_s23 + $0x28] sm:$0xff] %vm788_vm2, %v777_v0  ;;  %v1052_v6 = vadd.f32 %v701_v5, %v513_v4  ;;  %v1018_v7 = vpop.f32.mrb[10].mxu1  ;;  %v1036_v8 = vpop.f32.mrb[10].mxu0 }
 0x10f   : > { %v759_v9 = vmul.f32 %v1051_v3, %v1309_v32  ;;  %v1053_v10 = vadd.f32 %v1036_v8, %v1018_v7  ;;  %v516_v11 = vpop.f32.mrb[11].mxu1  ;;  %v704_v12 = vpop.f32.mrb[11].mxu0 }
 0x110   : > { %v757_v13 = vmul.f32 %v1052_v6, %v1309_v32  ;;  %v1054_v14 = vadd.f32 %v704_v12, %v516_v11 }
 0x111   : > { %v782_v15 = vadd.f32 %v1314_v35, %v759_v9  ;;  %v760_v16 = vmul.f32 %v1053_v10, %v1309_v32 }
 0x112   : > { %v780_v17 = vadd.f32 %v1314_v35, %v757_v13  ;;  %v758_v18 = vmul.f32 %v1054_v14, %v1309_v32 }
 0x113   : > { %799 = vst.msk [vmem:[%s1320_s23 + $0x50] sm:$0xff] %vm788_vm2, %v782_v15  ;;  %v783_v19 = vadd.f32 %v1314_v35, %v760_v16 }
 0x114   : > { %797 = vst.msk [vmem:[%s1320_s23 + $0x40] sm:$0xff] %vm788_vm2, %v780_v17  ;;  %v781_v20 = vadd.f32 %v1314_v35, %v758_v18  ;;  %v1021_v21 = vpop.f32.mrb[12].mxu1  ;;  %v1039_v22 = vpop.f32.mrb[12].mxu0 }
 0x115   : > { %800 = vst.msk [vmem:[%s1320_s23 + $0x58] sm:$0xff] %vm788_vm2, %v783_v19  ;;  %v1055_v23 = vadd.f32 %v1039_v22, %v1021_v21  ;;  %v529_v24 = vpop.f32.mrb[13].mxu1  ;;  %v717_v25 = vpop.f32.mrb[13].mxu0 }
 0x116   : > { %798 = vst.msk [vmem:[%s1320_s23 + $0x48] sm:$0xff] %vm788_vm2, %v781_v20  ;;  %v1056_v26 = vadd.f32 %v717_v25, %v529_v24  ;;  %v1022_v27 = vpop.f32.mrb[14].mxu1  ;;  %v1040_v28 = vpop.f32.mrb[14].mxu0 }
 0x117   : > { %v763_v29 = vmul.f32 %v1055_v23, %v1309_v32  ;;  %v1057_v30 = vadd.f32 %v1040_v28, %v1022_v27  ;;  %v532_v31 = vpop.f32.mrb[15].mxu1  ;;  %v720_v33 = vpop.f32.mrb[15].mxu0 }
 0x118   : > { %v761_v34 = vmul.f32 %v1056_v26, %v1309_v32  ;;  %v1058_v36 = vadd.f32 %v720_v33, %v532_v31 }
 0x119   : > { %v786_v37 = vadd.f32 %v1314_v35, %v763_v29  ;;  %v764_v38 = vmul.f32 %v1057_v30, %v1309_v32 }
 0x11a   : > { %v784_v39 = vadd.f32 %v1314_v35, %v761_v34  ;;  %v762_v40 = vmul.f32 %v1058_v36, %v1309_v32 }
 0x11b   : > { %803 = vst.msk [vmem:[%s1320_s23 + $0x70] sm:$0xff] %vm788_vm2, %v786_v37  ;;  %v787_v41 = vadd.f32 %v1314_v35, %v764_v38 }
 0x11c   : > { %801 = vst.msk [vmem:[%s1320_s23 + $0x60] sm:$0xff] %vm788_vm2, %v784_v39  ;;  %v785_v42 = vadd.f32 %v1314_v35, %v762_v40 }
 0x11d   : > { %804 = vst.msk [vmem:[%s1320_s23 + $0x78] sm:$0xff] %vm788_vm2, %v787_v41 }
 0x11e   : > { %802 = vst.msk [vmem:[%s1320_s23 + $0x68] sm:$0xff] %vm788_vm2, %v785_v42 }
 0x11f PF: > { %s15_s21 = sadd.s32 1, %s1179_s21   ;;  %s1405_s17 = smov %s1171_s19 }
 0x120   : > { %p12_p7 = scmp.ge.s32.totalorder %s15_s21, 6   ;;  %s1406_s18 = smov %s1175_s20 }
 0x121   : > { %s1407_s19 = smov %s1410_s0  ;;  %s1408_s20 = smov %s1414_s22 }
 0x122   :  { %14 = sbr.rel (!%p12_p7) target bundleno = 3 (0x3), region = 68 }

</bundles_post_ra>
